<compile_context>
chip_gen: v6e
topology: v6e:2x2x1
jax: 0.10.0
libtpu: 0.0.40
codegen_flags: <defaults>
</compile_context>

<pallas_src>
import functools

import numpy as np
import jax
import jax.numpy as jnp
from jax import lax
from jax.experimental import pallas as pl
from jax.experimental.pallas import tpu as pltpu


def _sepconv_kernel(x_ref, wdw_ref, wpw_ref, mask_ref, o_ref, *,
                    NB, C, O, W, K, pad):
    """One grid step = NB batch images.

    x_ref    : (1, NB*C, HWp)  flattened NCHW input slab (batch folded into sublanes)
    wdw_ref  : (NB*C, K*K)     depthwise taps, tiled per local batch image
    wpw_ref  : (O, C)          pointwise 1x1 weights
    mask_ref : (K*K, HWp)      merged row*col tap-validity masks (0./1.)
    o_ref    : (1, NB*O, HWp)  flattened NCHW output slab
    """
    HWp = x_ref.shape[2]

    x = x_ref[0].astype(jnp.float32)          # (NB*C, HWp), vreg-resident
    wdw = wdw_ref[...].astype(jnp.float32)    # (NB*C, K*K), loaded once
    wpw = wpw_ref[...].astype(jnp.float32)    # (O, C),      loaded once
    mask = mask_ref[...]                      # (K*K, HWp),  loaded once

    # Depthwise KxK conv: each tap is a lane rotation (XLU) of the resident
    # image; the merged mask zeroes row/col out-of-range (and roll wrap-around)
    # positions, the per-(batch,channel) weight column is a VPU FMA.  No
    # scratch, no per-tap loads/stores.
    acc = jnp.zeros(x.shape, jnp.float32)
    for kh in range(K):
        for kw in range(K):
            t = kh * K + kw
            off = (kh - pad) * W + (kw - pad)            # tap[p] = x[p + off]
            tap = x if off == 0 else pltpu.roll(x, (-off) % HWp, axis=1)
            acc = acc + (tap * mask[t:t + 1, :]) * wdw[:, t:t + 1]

    # Pointwise 1x1 conv on the VPU: per local batch image, C unrolled
    # broadcast-FMAs over a dense (O, HWp) slab (a depth-4 MXU matmul would be
    # <1% utilized and pay pipeline-fill / result-pop latency).
    outs = []
    for b in range(NB):
        out_b = jnp.zeros((O, HWp), jnp.float32)
        for c in range(C):
            r = b * C + c
            out_b = out_b + wpw[:, c:c + 1] * acc[r:r + 1, :]
        outs.append(out_b)
    out = outs[0] if NB == 1 else jnp.concatenate(outs, axis=0)   # (NB*O, HWp)

    # Single unmasked, 128-lane-aligned store of the NCHW-ordered output slab.
    o_ref[0] = out.astype(o_ref.dtype)


def _pick_batch_block(N, C):
    """Images per grid step.  Preferences, in order:
       (1) keep >= 2 grid steps when N >= 2 (one per v7x TensorCore;
           "do not collapse to grid=(1,)"),
       (2) NB*C a multiple of 8 (full sublane fill of the (NB*C, HW) slab),
       (3) larger NB (amortize the ~0.35us per-grid-step overhead).
       At N=2 (the test shape) (1) and (2) conflict; we keep two parallel steps.
       From N>=4 both are satisfied (e.g. N=8, C=4 -> NB=4, grid=2, NB*C=16)."""
    best, best_key = 1, (-1, -1)
    for nb in range(1, min(N, 8) + 1):
        if N % nb:
            continue
        if N >= 2 and (N // nb) < 2:
            continue
        key = (1 if (nb * C) % 8 == 0 else 0, nb)
        if key > best_key:
            best_key, best = key, nb
    return best


def separable_conv2d(x_nchw, w_dw, w_pw, *, ksize, stride=1, padding=0,
                     dilation=1):
    """x_nchw: (N, C, H, W); w_dw: (C, 1, K, K); w_pw: (O, C, 1, 1).
    Returns (N, O, H, W) (stride=1, dilation=1, 'same' padding)."""
    N, C, H, W = x_nchw.shape
    O = w_pw.shape[0]
    K = ksize
    if stride != 1 or dilation != 1 or 2 * padding != K - 1:
        # TODO(synk): general stride / dilation / padding not in the hot path.
        raise NotImplementedError(
            "only stride=1, dilation=1, 2*padding == ksize-1 supported")
    HW = H * W
    HWp = ((HW + 127) // 128) * 128          # lane-density guard (unmasked vst)

    NB = _pick_batch_block(N, C)
    G = N // NB

    # Free contiguous reshapes only (no NCHW<->NHWC transpose); optional zero
    # pad of the flattened spatial axis up to a 128-lane multiple.
    x_flat = x_nchw.reshape(N, C, HW)
    if HWp != HW:
        x_flat = jnp.pad(x_flat, ((0, 0), (0, 0), (0, HWp - HW)))
    x_blk = x_flat.reshape(G, NB * C, HWp)                # batch folded into sublanes

    wdw = jnp.tile(w_dw.reshape(C, K * K), (NB, 1))       # (NB*C, K*K)
    wpw = w_pw.reshape(O, C)                              # (O, C)

    # Merged row*col tap-validity mask, one row per (kh, kw) tap (constant, tiny).
    h_idx = np.arange(HW, dtype=np.int64) // W
    w_idx = np.arange(HW, dtype=np.int64) % W
    rows = []
    for kh in range(K):
        for kw in range(K):
            hh = h_idx + (kh - padding)
            ww = w_idx + (kw - padding)
            valid = ((hh >= 0) & (hh < H) & (ww >= 0) & (ww < W)).astype(np.float32)
            m = np.zeros((HWp,), np.float32)
            m[:HW] = valid
            rows.append(m)
    mask = jnp.asarray(np.stack(rows, axis=0))            # (K*K, HWp)

    kernel = functools.partial(_sepconv_kernel, NB=NB, C=C, O=O, W=W, K=K,
                               pad=padding)

    cost = pl.CostEstimate(
        flops=int(2 * N * HW * (C * K * K + O * C)),
        transcendentals=0,
        bytes_accessed=int(4 * (x_nchw.size + N * O * HW + w_dw.size + w_pw.size)),
    )

    out_blk = pl.pallas_call(
        kernel,
        out_shape=jax.ShapeDtypeStruct((G, NB * O, HWp), x_nchw.dtype),
        grid=(G,),
        in_specs=[
            pl.BlockSpec((1, NB * C, HWp), lambda n: (n, 0, 0)),
            pl.BlockSpec((NB * C, K * K), lambda n: (0, 0)),
            pl.BlockSpec((O, C), lambda n: (0, 0)),
            pl.BlockSpec((K * K, HWp), lambda n: (0, 0)),
        ],
        out_specs=pl.BlockSpec((1, NB * O, HWp), lambda n: (n, 0, 0)),
        compiler_params=pltpu.CompilerParams(
            dimension_semantics=("parallel",)),
        cost_estimate=cost,
    )(x_blk, wdw, wpw, mask)

    out = out_blk.reshape(N, O, HWp)
    if HWp != HW:
        out = out[:, :, :HW]
    return out.reshape(N, O, H, W)                        # NCHW, free reshape


def _reference(x_nchw, w_dw, w_pw, *, padding):
    """Pure-JAX reference (lax conv) mirroring the PyTorch module."""
    C = x_nchw.shape[1]
    dn = lax.conv_dimension_numbers(x_nchw.shape, w_dw.shape,
                                    ("NCHW", "OIHW", "NCHW"))
    y = lax.conv_general_dilated(x_nchw, w_dw, window_strides=(1, 1),
                                 padding=[(padding, padding),
                                          (padding, padding)],
                                 dimension_numbers=dn, feature_group_count=C)
    dn2 = lax.conv_dimension_numbers(y.shape, w_pw.shape,
                                     ("NCHW", "OIHW", "NCHW"))
    return lax.conv_general_dilated(y, w_pw, window_strides=(1, 1),
                                    padding=[(0, 0), (0, 0)],
                                    dimension_numbers=dn2)


if __name__ == "__main__":
    # Small deterministic config: N=2, in_ch=4, out_ch=8, H=W=16, ksize=3, pad=1.
    N, C, O, H, W = 2, 4, 8, 16, 16
    K, PAD = 3, 1

    key = jax.random.PRNGKey(0)
    kx, kd, kp = jax.random.split(key, 3)
    x = jax.random.normal(kx, (N, C, H, W), dtype=jnp.float32)
    # PyTorch weight shapes: depthwise (C, 1, K, K), pointwise (O, C, 1, 1).
    w_dw = jax.random.normal(kd, (C, 1, K, K), dtype=jnp.float32) * 0.1
    w_pw = jax.random.normal(kp, (O, C, 1, 1), dtype=jnp.float32) * 0.1

    out = separable_conv2d(x, w_dw, w_pw, ksize=K, padding=PAD)
    out = jax.block_until_ready(out)

    ref = _reference(x, w_dw, w_pw, padding=PAD)
    assert out.shape == (N, O, H, W), out.shape
    assert jnp.allclose(out, ref, atol=1e-4, rtol=1e-4), "mismatch vs reference"

    print("KERNEL_OK")
</pallas_src>

<mosaic_0001>
module attributes {stable_mosaic.version = 11 : i64} {
  func.func @_sepconv_kernel(%arg0: i32, %arg1: memref<1x4x256xf32, #tpu.memory_space<vmem>>, %arg2: memref<4x9xf32, #tpu.memory_space<vmem>>, %arg3: memref<8x4xf32, #tpu.memory_space<vmem>>, %arg4: memref<9x256xf32, #tpu.memory_space<vmem>>, %arg5: memref<1x8x256xf32, #tpu.memory_space<vmem>>) attributes {dimension_semantics = [#tpu.dimension_semantics<parallel>], iteration_bounds = array<i64: 2>, scalar_prefetch = 0 : i64, scratch_operands = 0 : i64, tpu.core_type = #tpu.core_type<tc>, window_params = [{transform_indices = @transform_0, window_bounds = array<i64: 1, 4, 256>}, {pipeline_mode = #tpu.pipeline_mode<synchronous>, transform_indices = @transform_1, window_bounds = array<i64: 4, 9>}, {pipeline_mode = #tpu.pipeline_mode<synchronous>, transform_indices = @transform_2, window_bounds = array<i64: 8, 4>}, {pipeline_mode = #tpu.pipeline_mode<synchronous>, transform_indices = @transform_3, window_bounds = array<i64: 9, 256>}, {transform_indices = @transform_4, window_bounds = array<i64: 1, 8, 256>}]} {
    %c0 = arith.constant 0 : index
    %c0_0 = arith.constant 0 : index
    %c0_1 = arith.constant 0 : index
    %0 = vector.load %arg1[%c0, %c0_0, %c0_1] : memref<1x4x256xf32, #tpu.memory_space<vmem>>, vector<1x4x256xf32>
    %1 = vector.shape_cast %0 : vector<1x4x256xf32> to vector<4x256xf32>
    %c0_2 = arith.constant 0 : index
    %c0_3 = arith.constant 0 : index
    %2 = vector.load %arg2[%c0_2, %c0_3] : memref<4x9xf32, #tpu.memory_space<vmem>>, vector<4x9xf32>
    %c0_4 = arith.constant 0 : index
    %c0_5 = arith.constant 0 : index
    %3 = vector.load %arg3[%c0_4, %c0_5] : memref<8x4xf32, #tpu.memory_space<vmem>>, vector<8x4xf32>
    %c0_6 = arith.constant 0 : index
    %c0_7 = arith.constant 0 : index
    %4 = vector.load %arg4[%c0_6, %c0_7] : memref<9x256xf32, #tpu.memory_space<vmem>>, vector<9x256xf32>
    %cst = arith.constant 0.000000e+00 : f32
    %5 = vector.broadcast %cst : f32 to vector<4x256xf32>
    %c17_i32 = arith.constant 17 : i32
    %6 = tpu.dynamic_rotate %1 by %c17_i32 dim 1 : vector<4x256xf32>, i32 -> vector<4x256xf32>
    %7 = vector.extract_strided_slice %4 {offsets = [0, 0], sizes = [1, 256], strides = [1, 1]} : vector<9x256xf32> to vector<1x256xf32>
    %8 = vector.broadcast %7 : vector<1x256xf32> to vector<4x256xf32>
    %9 = arith.mulf %6, %8 : vector<4x256xf32>
    %10 = vector.extract_strided_slice %2 {offsets = [0, 0], sizes = [4, 1], strides = [1, 1]} : vector<4x9xf32> to vector<4x1xf32>
    %11 = vector.broadcast %10 : vector<4x1xf32> to vector<4x256xf32>
    %12 = arith.mulf %9, %11 : vector<4x256xf32>
    %13 = arith.addf %5, %12 : vector<4x256xf32>
    %c16_i32 = arith.constant 16 : i32
    %14 = tpu.dynamic_rotate %1 by %c16_i32 dim 1 : vector<4x256xf32>, i32 -> vector<4x256xf32>
    %15 = vector.extract_strided_slice %4 {offsets = [1, 0], sizes = [1, 256], strides = [1, 1]} : vector<9x256xf32> to vector<1x256xf32>
    %16 = vector.broadcast %15 : vector<1x256xf32> to vector<4x256xf32>
    %17 = arith.mulf %14, %16 : vector<4x256xf32>
    %18 = vector.extract_strided_slice %2 {offsets = [0, 1], sizes = [4, 1], strides = [1, 1]} : vector<4x9xf32> to vector<4x1xf32>
    %19 = vector.broadcast %18 : vector<4x1xf32> to vector<4x256xf32>
    %20 = arith.mulf %17, %19 : vector<4x256xf32>
    %21 = arith.addf %13, %20 : vector<4x256xf32>
    %c15_i32 = arith.constant 15 : i32
    %22 = tpu.dynamic_rotate %1 by %c15_i32 dim 1 : vector<4x256xf32>, i32 -> vector<4x256xf32>
    %23 = vector.extract_strided_slice %4 {offsets = [2, 0], sizes = [1, 256], strides = [1, 1]} : vector<9x256xf32> to vector<1x256xf32>
    %24 = vector.broadcast %23 : vector<1x256xf32> to vector<4x256xf32>
    %25 = arith.mulf %22, %24 : vector<4x256xf32>
    %26 = vector.extract_strided_slice %2 {offsets = [0, 2], sizes = [4, 1], strides = [1, 1]} : vector<4x9xf32> to vector<4x1xf32>
    %27 = vector.broadcast %26 : vector<4x1xf32> to vector<4x256xf32>
    %28 = arith.mulf %25, %27 : vector<4x256xf32>
    %29 = arith.addf %21, %28 : vector<4x256xf32>
    %c1_i32 = arith.constant 1 : i32
    %30 = tpu.dynamic_rotate %1 by %c1_i32 dim 1 : vector<4x256xf32>, i32 -> vector<4x256xf32>
    %31 = vector.extract_strided_slice %4 {offsets = [3, 0], sizes = [1, 256], strides = [1, 1]} : vector<9x256xf32> to vector<1x256xf32>
    %32 = vector.broadcast %31 : vector<1x256xf32> to vector<4x256xf32>
    %33 = arith.mulf %30, %32 : vector<4x256xf32>
    %34 = vector.extract_strided_slice %2 {offsets = [0, 3], sizes = [4, 1], strides = [1, 1]} : vector<4x9xf32> to vector<4x1xf32>
    %35 = vector.broadcast %34 : vector<4x1xf32> to vector<4x256xf32>
    %36 = arith.mulf %33, %35 : vector<4x256xf32>
    %37 = arith.addf %29, %36 : vector<4x256xf32>
    %38 = vector.extract_strided_slice %4 {offsets = [4, 0], sizes = [1, 256], strides = [1, 1]} : vector<9x256xf32> to vector<1x256xf32>
    %39 = vector.broadcast %38 : vector<1x256xf32> to vector<4x256xf32>
    %40 = arith.mulf %1, %39 : vector<4x256xf32>
    %41 = vector.extract_strided_slice %2 {offsets = [0, 4], sizes = [4, 1], strides = [1, 1]} : vector<4x9xf32> to vector<4x1xf32>
    %42 = vector.broadcast %41 : vector<4x1xf32> to vector<4x256xf32>
    %43 = arith.mulf %40, %42 : vector<4x256xf32>
    %44 = arith.addf %37, %43 : vector<4x256xf32>
    %c255_i32 = arith.constant 255 : i32
    %45 = tpu.dynamic_rotate %1 by %c255_i32 dim 1 : vector<4x256xf32>, i32 -> vector<4x256xf32>
    %46 = vector.extract_strided_slice %4 {offsets = [5, 0], sizes = [1, 256], strides = [1, 1]} : vector<9x256xf32> to vector<1x256xf32>
    %47 = vector.broadcast %46 : vector<1x256xf32> to vector<4x256xf32>
    %48 = arith.mulf %45, %47 : vector<4x256xf32>
    %49 = vector.extract_strided_slice %2 {offsets = [0, 5], sizes = [4, 1], strides = [1, 1]} : vector<4x9xf32> to vector<4x1xf32>
    %50 = vector.broadcast %49 : vector<4x1xf32> to vector<4x256xf32>
    %51 = arith.mulf %48, %50 : vector<4x256xf32>
    %52 = arith.addf %44, %51 : vector<4x256xf32>
    %c241_i32 = arith.constant 241 : i32
    %53 = tpu.dynamic_rotate %1 by %c241_i32 dim 1 : vector<4x256xf32>, i32 -> vector<4x256xf32>
    %54 = vector.extract_strided_slice %4 {offsets = [6, 0], sizes = [1, 256], strides = [1, 1]} : vector<9x256xf32> to vector<1x256xf32>
    %55 = vector.broadcast %54 : vector<1x256xf32> to vector<4x256xf32>
    %56 = arith.mulf %53, %55 : vector<4x256xf32>
    %57 = vector.extract_strided_slice %2 {offsets = [0, 6], sizes = [4, 1], strides = [1, 1]} : vector<4x9xf32> to vector<4x1xf32>
    %58 = vector.broadcast %57 : vector<4x1xf32> to vector<4x256xf32>
    %59 = arith.mulf %56, %58 : vector<4x256xf32>
    %60 = arith.addf %52, %59 : vector<4x256xf32>
    %c240_i32 = arith.constant 240 : i32
    %61 = tpu.dynamic_rotate %1 by %c240_i32 dim 1 : vector<4x256xf32>, i32 -> vector<4x256xf32>
    %62 = vector.extract_strided_slice %4 {offsets = [7, 0], sizes = [1, 256], strides = [1, 1]} : vector<9x256xf32> to vector<1x256xf32>
    %63 = vector.broadcast %62 : vector<1x256xf32> to vector<4x256xf32>
    %64 = arith.mulf %61, %63 : vector<4x256xf32>
    %65 = vector.extract_strided_slice %2 {offsets = [0, 7], sizes = [4, 1], strides = [1, 1]} : vector<4x9xf32> to vector<4x1xf32>
    %66 = vector.broadcast %65 : vector<4x1xf32> to vector<4x256xf32>
    %67 = arith.mulf %64, %66 : vector<4x256xf32>
    %68 = arith.addf %60, %67 : vector<4x256xf32>
    %c239_i32 = arith.constant 239 : i32
    %69 = tpu.dynamic_rotate %1 by %c239_i32 dim 1 : vector<4x256xf32>, i32 -> vector<4x256xf32>
    %70 = vector.extract_strided_slice %4 {offsets = [8, 0], sizes = [1, 256], strides = [1, 1]} : vector<9x256xf32> to vector<1x256xf32>
    %71 = vector.broadcast %70 : vector<1x256xf32> to vector<4x256xf32>
    %72 = arith.mulf %69, %71 : vector<4x256xf32>
    %73 = vector.extract_strided_slice %2 {offsets = [0, 8], sizes = [4, 1], strides = [1, 1]} : vector<4x9xf32> to vector<4x1xf32>
    %74 = vector.broadcast %73 : vector<4x1xf32> to vector<4x256xf32>
    %75 = arith.mulf %72, %74 : vector<4x256xf32>
    %76 = arith.addf %68, %75 : vector<4x256xf32>
    %cst_8 = arith.constant 0.000000e+00 : f32
    %77 = vector.broadcast %cst_8 : f32 to vector<8x256xf32>
    %78 = vector.extract_strided_slice %3 {offsets = [0, 0], sizes = [8, 1], strides = [1, 1]} : vector<8x4xf32> to vector<8x1xf32>
    %79 = vector.extract_strided_slice %76 {offsets = [0, 0], sizes = [1, 256], strides = [1, 1]} : vector<4x256xf32> to vector<1x256xf32>
    %80 = vector.broadcast %78 : vector<8x1xf32> to vector<8x256xf32>
    %81 = vector.broadcast %79 : vector<1x256xf32> to vector<8x256xf32>
    %82 = arith.mulf %80, %81 : vector<8x256xf32>
    %83 = arith.addf %77, %82 : vector<8x256xf32>
    %84 = vector.extract_strided_slice %3 {offsets = [0, 1], sizes = [8, 1], strides = [1, 1]} : vector<8x4xf32> to vector<8x1xf32>
    %85 = vector.extract_strided_slice %76 {offsets = [1, 0], sizes = [1, 256], strides = [1, 1]} : vector<4x256xf32> to vector<1x256xf32>
    %86 = vector.broadcast %84 : vector<8x1xf32> to vector<8x256xf32>
    %87 = vector.broadcast %85 : vector<1x256xf32> to vector<8x256xf32>
    %88 = arith.mulf %86, %87 : vector<8x256xf32>
    %89 = arith.addf %83, %88 : vector<8x256xf32>
    %90 = vector.extract_strided_slice %3 {offsets = [0, 2], sizes = [8, 1], strides = [1, 1]} : vector<8x4xf32> to vector<8x1xf32>
    %91 = vector.extract_strided_slice %76 {offsets = [2, 0], sizes = [1, 256], strides = [1, 1]} : vector<4x256xf32> to vector<1x256xf32>
    %92 = vector.broadcast %90 : vector<8x1xf32> to vector<8x256xf32>
    %93 = vector.broadcast %91 : vector<1x256xf32> to vector<8x256xf32>
    %94 = arith.mulf %92, %93 : vector<8x256xf32>
    %95 = arith.addf %89, %94 : vector<8x256xf32>
    %96 = vector.extract_strided_slice %3 {offsets = [0, 3], sizes = [8, 1], strides = [1, 1]} : vector<8x4xf32> to vector<8x1xf32>
    %97 = vector.extract_strided_slice %76 {offsets = [3, 0], sizes = [1, 256], strides = [1, 1]} : vector<4x256xf32> to vector<1x256xf32>
    %98 = vector.broadcast %96 : vector<8x1xf32> to vector<8x256xf32>
    %99 = vector.broadcast %97 : vector<1x256xf32> to vector<8x256xf32>
    %100 = arith.mulf %98, %99 : vector<8x256xf32>
    %101 = arith.addf %95, %100 : vector<8x256xf32>
    %c0_9 = arith.constant 0 : index
    %c0_10 = arith.constant 0 : index
    %c0_11 = arith.constant 0 : index
    %102 = vector.load %arg5[%c0_9, %c0_10, %c0_11] : memref<1x8x256xf32, #tpu.memory_space<vmem>>, vector<1x8x256xf32>
    %103 = vector.shape_cast %102 : vector<1x8x256xf32> to vector<8x256xf32>
    %104 = vector.shape_cast %101 : vector<8x256xf32> to vector<1x8x256xf32>
    tpu.vector_store %arg5[%c0_9, %c0_10, %c0_11], %104 {strides = array<i32>} : memref<1x8x256xf32, #tpu.memory_space<vmem>>, vector<1x8x256xf32>,
    return
  }
  func.func @transform_0(%arg0: i32) -> (i32, i32, i32) {
    %c0_i32 = arith.constant 0 : i32
    %c0_i32_0 = arith.constant 0 : i32
    %c0_i32_1 = arith.constant 0 : i32
    return %arg0, %c0_i32, %c0_i32_0 : i32, i32, i32
  }
  func.func @transform_1(%arg0: i32) -> (i32, i32) {
    %c0_i32 = arith.constant 0 : i32
    %c0_i32_0 = arith.constant 0 : i32
    %c0_i32_1 = arith.constant 0 : i32
    return %c0_i32, %c0_i32_0 : i32, i32
  }
  func.func @transform_2(%arg0: i32) -> (i32, i32) {
    %c0_i32 = arith.constant 0 : i32
    %c0_i32_0 = arith.constant 0 : i32
    %c0_i32_1 = arith.constant 0 : i32
    return %c0_i32, %c0_i32_0 : i32, i32
  }
  func.func @transform_3(%arg0: i32) -> (i32, i32) {
    %c0_i32 = arith.constant 0 : i32
    %c0_i32_0 = arith.constant 0 : i32
    %c0_i32_1 = arith.constant 0 : i32
    return %c0_i32, %c0_i32_0 : i32, i32
  }
  func.func @transform_4(%arg0: i32) -> (i32, i32, i32) {
    %c0_i32 = arith.constant 0 : i32
    %c0_i32_0 = arith.constant 0 : i32
    %c0_i32_1 = arith.constant 0 : i32
    return %arg0, %c0_i32, %c0_i32_0 : i32, i32, i32
  }
}

</mosaic_0001>

<bundles_post_ra>
// kernel: tpu_custom_call.1
= control target key start
LH: loop header
LB: loop body
LE: loop exit
PB: predicated region body
PF: predicated region fallthrough
CT: control target
= control target key end

     0   :  { %9 = vsyncpa [#allocation3], 0  ;;  %s1190_s0 = inlined_call_operand.hbm [shape: f32[2,4,256], index: 0, kind: input, shape index: {}]   ;;  %s1191_s1 = inlined_call_operand.vmem [shape: f32[4,9], index: 1, kind: input, shape index: {}]   ;;  %s1192_s2 = inlined_call_operand.vmem [shape: f32[8,4], index: 2, kind: input, shape index: {}]   ;;  %s1193_s3 = inlined_call_operand.hbm [shape: f32[9,256], index: 3, kind: input, shape index: {}]   ;;  %s1194_s4 = inlined_call_operand.hbm [shape: f32[2,8,256], index: 4, kind: output, shape index: {}]  }
   0x1   :  { %11 = vsyncpa [#allocation3 + $0x1], 0 }
   0x2   :  { %12 = vsyncpa [#allocation6], 0 }
   0x3   :  { %13 = vsyncpa [#allocation4], 0 }
   0x4   :  { %15 = vsyncpa [#allocation4 + $0x1], 0  ;;  %s917_s15 = smov 0   ;;  %s919_s16 = smov 0  }
   0x5   :  { %s921_s17 = smov 0   ;;  %s923_s18 = smov 0  }
   0x6 LB: > { %s938_s19 = sadd.s32 4294967295, %s867_s18   ;;  %s634_s20 = sadd.s32 4294967294, %s867_s18   ;;  %s867_s18 = sphi %s923_s18, %s1216_s18   ;;  %s863_s17 = sphi %s921_s17, %s1215_s17   ;;  %s859_s16 = sphi %s919_s16, %s1214_s16   ;;  %s855_s15 = sphi %s917_s15, %s1213_s15  }
   0x7   : > { %p41_p0 = scmp.ne.s32.totalorder %s859_s16, %s855_s15  ;;  %p1195_p1 = scmp.eq.s32.totalorder %s938_s19, 0 }
   0x8   : > { %p134_p3 = scmp.eq.s32.totalorder %s634_s20, 1  ;;  %p635_p5 = scmp.ge.s32.totalorder %s867_s18, 1 }
   0x9   : > { %p947_p4 = por %p1195_p1, %p41_p0  ;;  %p141_p7 = scmp.lt.s32.totalorder %s867_s18, 3 }
   0xa   : > { %p952_p6 = por %p134_p3, %p41_p0  ;;  %s869_s24 = smov [#allocation5]  }
   0xb   : > { %s1199_s21 = scalar_select %p947_p4, 1, 0 }
   0xc   : > { %s1200_s22 = scalar_select %p952_p6, 1, 0 }
   0xd   : > { %p957_p8 = pnand %p635_p5, %p141_p7  ;;  %s159_s25 = sshll.u32 %s869_s24, 4  ;;  %s160_s25 = int_to_ptr.vmem [resolvable:$true] %s159_s25 }
   0xe   : > { %s971_s27 = sadd.s32 1, %s867_s18   ;;  %s28_s28 = sadd.s32 1, %s863_s17 }
   0xf   : > { %s1201_s23 = scalar_select %p957_p8, 1, 0 }
  0x10   : > { %p662_p9 = pneg %p957_p8  ;;  %s25_s29 = ssub.s32 %s867_s18, %s971_s27 }
  0x11   : > { %s756_s30 = scalar_lea.vmem %s160_s25, 512  ;;  %p764_p5 = scmp.lt.s32.totalorder %s160_s25, %s160_s25 }
  0x12   : > { %p966_p11 = pnand %p662_p9, %p1195_p1  ;;  %p757_p13 = scmp.ne.s32.totalorder %s160_s25, %s756_s30 }
  0x13   : > { %p765_p7 = scmp.lt.s32.totalorder %s756_s30, %s756_s30 }
  0x14   : > { %p747_p12 = pneg %p966_p11 }
  0x15   : > { %p766_p10 = por %p765_p7, %p764_p5 }
  0x16   : > { %p759_p0 = pnand %p757_p13, %p747_p12 }
  0x18   : > { %p760_p3 = pneg %p759_p0 }
  0x1a   : > { %p767_p2 = pnand %p766_p10, %p760_p3 }
  0x1c   : > { %770 = shalt.err (!%p767_p2)
}
  0x1d   : > { %s870_s5 = smov 256   ;;  %s871_s6 = smov 16  }
  0x1e   : > { %665 = dma.hbm_to_vmem [thread:$0]  (!%p966_p11), %s1193_s3, 512, %s160_s25, [#allocation6], %s870_s5, %s870_s5, %s871_s6  }
  0x1f   : > { %p26_p9 = scmp.eq.s32.totalorder %s25_s29, 0  ;;  %p35_p12 = scmp.ne.s32.totalorder %s863_s17, %s859_s16 }
  0x20   : > { %p36_p10 = scmp.eq.s32.totalorder %s867_s18, 0  ;;  %p675_p2 = scmp.lt.s32.totalorder %s867_s18, 2 }
  0x21   : > { %s988_s9 = scalar_select %p26_p9, %s863_s17, %s28_s28  }
  0x22   : > { %p37_p13 = por %p36_p10, %p35_p12  ;;  %p1203_p0 = scmp.eq.s32.totalorder %s938_s19, 1 }
  0x23   : > { %s173_s11 = sand.u32 1, %s863_s17   ;;  %s652_s12 = sshll.u32 %s867_s18, 7 }
  0x24   : > { %p992_p3 = por %p1203_p0, %p35_p12  ;;  %s638_s13 = sshll.u32 %s173_s11, 3 }
  0x25   : > { %s1001_s24 = scalar_lea.hbm %s1190_s0, %s652_s12  ;;  %s177_s25 = scalar_lea.vmem [#allocation2], %s638_s13 }
  0x26   : > { %s1204_s10 = scalar_select %p992_p3, 1, 0 }
  0x27   : > { %s185_s26 = sshll.u32 %s177_s25, 4  ;;  %p1003_p11 = pnand %p675_p2, %p37_p13  ;;  %s186_s26 = int_to_ptr.vmem [resolvable:$true] %s185_s26 }
  0x28   : > { %s174_s29 = scalar_lea.sflag [#allocation3], %s173_s11  ;;  %s771_s30 = scalar_lea.hbm %s1001_s24, 128 }
  0x29   : > { %p772_p5 = scmp.ne.s32.totalorder %s1001_s24, %s771_s30  ;;  %p773_p7 = pneg %p1003_p11 }
  0x2a   : > { %s776_s7 = scalar_lea.hbm %s1190_s0, 256  ;;  %p777_p10 = scmp.lt.s32.totalorder %s1001_s24, %s1190_s0 }
  0x2b   : > { %p774_p9 = pnand %p773_p7, %p772_p5  ;;  %p778_p2 = scmp.lt.s32.totalorder %s776_s7, %s771_s30 }
  0x2d   : > { %p775_p12 = pneg %p774_p9  ;;  %p779_p13 = por %p778_p2, %p777_p10 }
  0x2f   : > { %p780_p0 = pnand %p779_p13, %p775_p12 }
  0x31   : > { %783 = shalt.err (!%p780_p0)
}
  0x32   : > { %s784_s13 = scalar_lea.vmem %s186_s26, 128  ;;  %s872_s11 = smov [#allocation2]  }
  0x33   : > { %p785_p1 = scmp.ne.s32.totalorder %s186_s26, %s784_s13  ;;  %s789_s14 = sshll.u32 %s872_s11, 4  ;;  %s790_s14 = int_to_ptr.vmem [resolvable:$false] %s789_s14 }
  0x34   : > { %s791_s20 = scalar_lea.vmem %s790_s14, 256  ;;  %p792_p5 = scmp.lt.s32.totalorder %s186_s26, %s790_s14 }
  0x35   : > { %p787_p6 = pnand %p785_p1, %p773_p7  ;;  %p793_p9 = scmp.lt.s32.totalorder %s791_s20, %s784_s13 }
  0x37   : > { %p788_p3 = pneg %p787_p6  ;;  %p794_p4 = por %p793_p9, %p792_p5 }
  0x39   : > { %p795_p8 = pnand %p794_p4, %p788_p3 }
  0x3b   : > { %798 = shalt.err (!%p795_p8)
}
  0x3c   : > { %669 = dma.hbm_to_vmem [thread:$0]  (!%p1003_p11), %s1001_s24, 128, %s186_s26, %s174_s29  }
  0x3d   : > { %p1206_p12 = scmp.ne.s32.totalorder %s1201_s23, 0 }
  0x3e   : > { %s1024_s25 = sand.u32 (!%p1206_p12), 1, %s859_s16   ;;  %p1207_p1 = scmp.ne.s32.totalorder (!%p1206_p12), %s1199_s21, 0 }
  0x3f   : > { %194 = sbr.rel (%p1206_p12) target bundleno = 288 (0x120), region = 36  ;;  %s642_s30 = sshll.u32 (!%p1206_p12), %s1024_s25, 3 }
  0x40   : > { %s197_s5 = scalar_lea.sflag (!%p1206_p12), [#allocation3], %s1024_s25  ;;  %s200_s6 = scalar_lea.vmem (!%p1206_p12), [#allocation2], %s642_s30 }
  0x44   : > { %842 = dma.done.wait (%p1207_p1), %s197_s5, 128  }
  0x45   : > { %844 = vsyncadd (%p1207_p1), %s197_s5, 4294967168  ;;  %p1208_p4 = scmp.eq.s32.totalorder %s938_s19, 0 }
  0x47   : > { %846 = dma.done.wait (%p1208_p4), [#allocation6], 512   ;;  %p1209_p6 = pmov %p1208_p4 }
  0x48   : > { %v873_v0 = vmov 0   ;;  %v874_v1 = vmov 2   ;;  %v230_v2 = vld [vmem:[%s1191_s1] sm:$0xf]  ;;  %s875_s26 = smov 17   ;;  %v876_v4 = vmov 1   ;;  %v243_v21 = vlaneseq }
  0x49   : > { %848 = vsyncadd (%p1209_p6), [#allocation6], 4294966784  ;;  %731 = vset.pattern.permute.xlu0 %v873_v0  ;;  %733 = vset.pattern.permute.xlu1 %v874_v1  ;;  %v1039_v3 = vld [vmem:[%s200_s6] sm:$0xff]  ;;  %s877_s21 = smov 16   ;;  %v878_v6 = vmov 4   ;;  %s879_s28 = smov 15  }
  0x4a   : > { %260 = vperm.xlu0 %731, %v230_v2   ;;  %239 = vrot.lane.b32.xlu1 %v1039_v3, %s875_s26  ;;  %v237_v5 = vcombine.high %v1039_v3, %v1039_v3  ;;  %v880_v7 = vmov 3   ;;  %v881_v8 = vmov 5   ;;  %s882_s29 = smov 1   ;;  %v883_v9 = vmov 6   ;;  %s884_s7 = smov 127   ;;  %v231_v12 = vld [vmem:[%s1192_s2] sm:$0xff] }
  0x4b   : > { %v885_v10 = vmov 7   ;;  %v886_v11 = vmov 8   ;;  %s887_s8 = smov 113   ;;  %s888_s11 = smov 112   ;;  %v1058_v24 = vshrl.u32 %v243_v21, 7  ;;  %v1063_v29 = vand.u32 127, %v243_v21 }
  0x4c   : > { %s889_s14 = smov 111   ;;  %v890_v26 = vmov 839922192   ;;  %v1068_v32 = vld [vmem:[#allocation5] sm:$0xff]  ;;  %v1070_v33 = vld [vmem:[#allocation5 + $0x8] sm:$0xff]  ;;  %s644_s20 = sshll.u32 %s1024_s25, 4 }
  0x4d   : > { %v344_v25 = vsub.s32 4, %v1058_v24  ;;  %v359_v27 = vunpack.c.l.s4 %v890_v26  ;;  %v1066_v30 = vsub.s32 0, %v1058_v24  ;;  %v1073_v34 = vsub.s32 1, %v1058_v24  ;;  %s653_s30 = sshll.u32 %s938_s19, 8  ;;  %s228_s5 = scalar_lea.vmem [#allocation7], %s644_s20 }
  0x4e   : > { %732 = vset.pattern.permute.xlu0 %v876_v4  ;;  %267 = vrot.lane.b32.xlu1 %v1039_v3, %s877_s21  ;;  %v1076_v35 = vsub.s32 2, %v1058_v24  ;;  %vm271_vm0 = vcmp.lt.s32.totalorder %v1063_v29, 16  ;;  %vm245_vm1 = vcmp.lt.s32.totalorder %v1063_v29, 17  ;;  %vm296_vm2 = vcmp.lt.s32.totalorder %v1063_v29, 15  ;;  %s554_s6 = sshll.u32 %s228_s5, 4  ;;  %p1210_p3 = scmp.ne.s32.totalorder %s1204_s10, 0  ;;  %s555_s6 = int_to_ptr.vmem [resolvable:$true] %s554_s6 }
  0x4f   : > { %285 = vperm.xlu0 %732, %v230_v2   ;;  %v345_v36 = vrot.slane %v1068_v32, %v344_v25  ;;  %v349_v37 = vrot.slane %v1070_v33, %v344_v25  ;;  %v360_v38 = vunpack.c.0.s8 %v359_v27  ;;  %v251_v40 = vrot.slane %v1068_v32, %v1066_v30  ;;  %s891_s19 = smov [#allocation7]  }
  0x50   : > { %v255_v41 = vrot.slane %v1070_v33, %v1066_v30  ;;  %v277_v43 = vrot.slane %v1068_v32, %v1073_v34  ;;  %v281_v44 = vrot.slane %v1070_v33, %v1073_v34  ;;  %v1092_v45 = vsub.s32 3, %v1058_v24 }
  0x51   : > { %v302_v48 = vrot.slane %v1068_v32, %v1076_v35  ;;  %v352_v49 = vcombine.low %v345_v36, %v349_v37  ;;  %v306_v50 = vrot.slane %v1070_v33, %v1076_v35  ;;  %v363_v51 = vsub.s32 %v360_v38, %v1058_v24 }
  0x52   : > { %241 = vrot.lane.b32.xlu1 %v237_v5, %s875_s26  ;;  %vm321_vm3 = vcmp.lt.s32.totalorder %v1063_v29, 1  ;;  %v381_v52 = vsub.s32 5, %v1058_v24  ;;  %v327_v60 = vrot.slane %v1068_v32, %v1092_v45  ;;  %v331_v61 = vrot.slane %v1070_v33, %v1092_v45  ;;  %s1153_s26 = scalar_lea.hbm %s1194_s4, %s653_s30 }
  0x53   : > { %269 = vrot.lane.b32.xlu0 %v237_v5, %s877_s21  ;;  %v354_v62 = vmul.f32 %v352_v49, %v1039_v3  ;;  %vm376_vm4 = vcmp.lt.s32.totalorder %v1063_v29, 127  ;;  %vm401_vm5 = vcmp.lt.s32.totalorder %v1063_v29, 113  ;;  %vm426_vm6 = vcmp.lt.s32.totalorder %v1063_v29, 112  ;;  %s540_s21 = scalar_lea.sflag [#allocation4], %s1024_s25 }
  0x54   : > { %734 = vset.pattern.permute.xlu0 %v878_v6  ;;  %vm451_vm7 = vcmp.lt.s32.totalorder %v1063_v29, 111 }
  0x56   : > { %310 = vperm.xlu1 %733, %v230_v2  }
  0x57   : > { %356 = vperm.xlu0 %734, %v230_v2  }
  0x5a   : > { %292 = vrot.lane.b32.xlu1 %v1039_v3, %s879_s28 }
  0x5b   : > { %735 = vset.pattern.permute.xlu0 %v880_v7  ;;  %741 = vset.pattern.permute.xlu1 %v876_v4 }
  0x5c   : > { %335 = vperm.xlu0 %735, %v230_v2  }
  0x5e   : > { %294 = vrot.lane.b32.xlu1 %v237_v5, %s879_s28  ;;  %s799_s28 = scalar_lea.vmem %s555_s6, 256 }
  0x5f   : > { %p800_p8 = scmp.ne.s32.totalorder %s555_s6, %s799_s28 }
  0x60   : > { %736 = vset.pattern.permute.xlu0 %v881_v8 }
  0x61   : > { %390 = vperm.xlu0 %736, %v230_v2   ;;  %p801_p11 = pnand %p800_p8, %p1210_p3 }
  0x62   : > { %317 = vrot.lane.b32.xlu1 %v1039_v3, %s882_s29 }
  0x63   : > { %p802_p7 = pneg %p801_p11 }
  0x65   : > { %737 = vset.pattern.permute.xlu0 %v883_v9 }
  0x66   : > { %319 = vrot.lane.b32.xlu1 %v237_v5, %s882_s29  ;;  %415 = vperm.xlu0 %737, %v230_v2   ;;  %s803_s29 = sshll.u32 %s891_s19, 4  ;;  %s804_s29 = int_to_ptr.vmem [resolvable:$false] %s803_s29 }
  0x67   : > { %p806_p10 = scmp.lt.s32.totalorder %s555_s6, %s804_s29 }
  0x6a   : > { %372 = vrot.lane.b32.xlu1 %v1039_v3, %s884_s7  ;;  %738 = vset.pattern.permute.xlu0 %v885_v10  ;;  %v382_v10 = vrot.slane %v1068_v32, %v381_v52 }
  0x6b   : > { %440 = vperm.xlu0 %738, %v230_v2  }
  0x6e   : > { %374 = vrot.lane.b32.xlu1 %v237_v5, %s884_s7  ;;  %s805_s7 = scalar_lea.vmem %s804_s29, 512 }
  0x6f   : > { %739 = vset.pattern.permute.xlu0 %v886_v11  ;;  %v386_v11 = vrot.slane %v1070_v33, %v381_v52  ;;  %p807_p2 = scmp.lt.s32.totalorder %s805_s7, %s799_s28 }
  0x70   : > { %465 = vperm.xlu0 %739, %v230_v2   ;;  %v406_v2 = vsub.s32 6, %v1058_v24 }
  0x71   : > { %p808_p13 = por %p807_p2, %p806_p10 }
  0x72   : > { %397 = vrot.lane.b32.xlu1 %v1039_v3, %s887_s8 }
  0x73   : > { %p809_p0 = pnand %p808_p13, %p802_p7 }
  0x74   : > { %740 = vset.pattern.permute.xlu0 %v873_v0 }
  0x75   : > { %474 = vperm.xlu0 %740, %v231_v12  }
  0x76   : > { %399 = vrot.lane.b32.xlu1 %v237_v5, %s887_s8 }
  0x79   : > { %743 = vset.pattern.permute.xlu0 %v880_v7 }
  0x7a   : > { %422 = vrot.lane.b32.xlu1 %v1039_v3, %s888_s11  ;;  %522 = vperm.xlu0 %743, %v231_v12  }
  0x7e   : > { %424 = vrot.lane.b32.xlu1 %v237_v5, %s888_s11 }
  0x82   : > { %447 = vrot.lane.b32.xlu1 %v1039_v3, %s889_s14 }
  0x86   : > { %449 = vrot.lane.b32.xlu1 %v237_v5, %s889_s14 }
  0x8a   : > { %490 = vperm.xlu1 %741, %v231_v12  }
  0x8e   : > { %742 = vset.pattern.permute.xlu1 %v874_v1 }
  0x8f   : > { %506 = vperm.xlu1 %742, %v231_v12  }
  0xbc   : > { %v240_v13 = vpop.permute.xlu1 %239 }
  0xc0   : > { %v268_v14 = vpop.permute.xlu1 %267 }
  0xc4   : > { %v242_v15 = vpop.permute.xlu1 %241 }
  0xc5   : > { %v1056_v19 = vpop.permute.xlu0 %260  ;;  %v246_v54 = vsel %vm245_vm1, %v240_v13, %v242_v15  ;;  %v247_v55 = vsel %vm245_vm1, %v242_v15, %v240_v13 }
  0xc6   : > { %v256_v4 = vmul.f32 %v251_v40, %v247_v55  ;;  %v257_v5 = vmul.f32 %v255_v41, %v246_v54 }
  0xc8   : > { %v263_v21 = vmul.f32 %v1056_v19, %v256_v4 }
  0xca   : > { %v286_v22 = vpop.permute.xlu0 %285 }
  0xce   : > { %v270_v31 = vpop.permute.xlu0 %269 }
  0xcf   : > { %v272_v46 = vsel %vm271_vm0, %v268_v14, %v270_v31  ;;  %v273_v47 = vsel %vm271_vm0, %v270_v31, %v268_v14 }
  0xd0   : > { %v282_v58 = vmul.f32 %v277_v43, %v273_v47  ;;  %v283_v59 = vmul.f32 %v281_v44, %v272_v46 }
  0xd1   : > { %v1054_v16 = vpop.permute.xlu1 %310 }
  0xd2   : > { %v357_v42 = vpop.permute.xlu0 %356  ;;  %v288_v12 = vmul.f32 %v286_v22, %v282_v58  ;;  %v289_v13 = vmul.f32 %v286_v22, %v283_v59 }
  0xd3   : > { %v364_v9 = vrot.slane %v357_v42, %v363_v51 }
  0xd5   : > { %v293_v17 = vpop.permute.xlu1 %292  ;;  %v366_v27 = vmul.f32 %v364_v9, %v354_v62 }
  0xd7   : > { %v336_v1 = vpop.permute.xlu0 %335 }
  0xd9   : > { %v295_v18 = vpop.permute.xlu1 %294 }
  0xda   : > { %v297_v56 = vsel %vm296_vm2, %v293_v17, %v295_v18  ;;  %v298_v57 = vsel %vm296_vm2, %v295_v18, %v293_v17  ;;  %v407_v17 = vrot.slane %v1068_v32, %v406_v2  ;;  %v411_v18 = vrot.slane %v1070_v33, %v406_v2 }
  0xdb   : > { %v307_v6 = vmul.f32 %v302_v48, %v298_v57  ;;  %v308_v7 = vmul.f32 %v306_v50, %v297_v56  ;;  %v368_v48 = vcombine.high %v366_v27, %v366_v27 }
  0xdc   : > { %v391_v15 = vpop.permute.xlu0 %390 }
  0xdd   : > { %v318_v20 = vpop.permute.xlu1 %317  ;;  %v313_v25 = vmul.f32 %v1054_v16, %v307_v6  ;;  %v314_v26 = vmul.f32 %v1054_v16, %v308_v7 }
  0xe1   : > { %v320_v23 = vpop.permute.xlu1 %319  ;;  %v416_v41 = vpop.permute.xlu0 %415 }
  0xe2   : > { %v322_v63 = vsel %vm321_vm3, %v318_v20, %v320_v23  ;;  %v323_v0 = vsel %vm321_vm3, %v320_v23, %v318_v20  ;;  %v431_v20 = vsub.s32 7, %v1058_v24  ;;  %v264_v23 = vmul.f32 %v1056_v19, %v257_v5 }
  0xe3   : > { %v332_v3 = vmul.f32 %v327_v60, %v323_v0  ;;  %v333_v14 = vmul.f32 %v331_v61, %v322_v63  ;;  %v290_v24 = vadd.f32 %v288_v12, %v263_v21  ;;  %v645_v63 = vld [vmem:[#allocation5 + $0x10] ss:$0 sm:$0xff]  ;;  %v646_v0 = vld [vmem:[#allocation5 + $0x18] ss:$0 sm:$0xff] }
  0xe4   : > { %v291_v37 = vadd.f32 %v289_v13, %v264_v23  ;;  %v432_v42 = vrot.slane %v1068_v32, %v431_v20  ;;  %v436_v43 = vrot.slane %v1070_v33, %v431_v20 }
  0xe5   : > { %v1061_v28 = vpop.permute.xlu1 %372  ;;  %v338_v38 = vmul.f32 %v336_v1, %v332_v3  ;;  %v339_v19 = vmul.f32 %v336_v1, %v333_v14  ;;  %v315_v44 = vadd.f32 %v313_v25, %v290_v24 }
  0xe6   : > { %v316_v46 = vadd.f32 %v314_v26, %v291_v37  ;;  %v441_v55 = vpop.permute.xlu0 %440 }
  0xe7   : > { %v340_v51 = vadd.f32 %v338_v38, %v315_v44 }
  0xe8   : > { %v341_v52 = vadd.f32 %v339_v19, %v316_v46 }
  0xe9   : > { %v375_v39 = vpop.permute.xlu1 %374  ;;  %v370_v59 = vadd.f32 %v366_v27, %v340_v51 }
  0xea   : > { %v377_v31 = vsel %vm376_vm4, %v1061_v28, %v375_v39  ;;  %v378_v36 = vsel %vm376_vm4, %v375_v39, %v1061_v28  ;;  %v371_v60 = vadd.f32 %v368_v48, %v341_v52 }
  0xeb   : > { %v387_v28 = vmul.f32 %v382_v10, %v377_v31  ;;  %v388_v39 = vmul.f32 %v386_v11, %v378_v36  ;;  %v466_v1 = vpop.permute.xlu0 %465 }
  0xed   : > { %v398_v53 = vpop.permute.xlu1 %397  ;;  %v393_v32 = vmul.f32 %v391_v15, %v387_v28  ;;  %v394_v56 = vmul.f32 %v391_v15, %v388_v39 }
  0xef   : > { %v395_v2 = vadd.f32 %v393_v32, %v370_v59  ;;  %v396_v4 = vadd.f32 %v394_v56, %v371_v60 }
  0xf1   : > { %v400_v8 = vpop.permute.xlu1 %399 }
  0xf2   : > { %v402_v40 = vsel %vm401_vm5, %v398_v53, %v400_v8  ;;  %v403_v16 = vsel %vm401_vm5, %v400_v8, %v398_v53 }
  0xf3   : > { %v412_v53 = vmul.f32 %v407_v17, %v402_v40  ;;  %v413_v54 = vmul.f32 %v411_v18, %v403_v16  ;;  %v475_v18 = vpop.permute.xlu0 %474 }
  0xf5   : > { %v423_v22 = vpop.permute.xlu1 %422  ;;  %v418_v61 = vmul.f32 %v416_v41, %v412_v53  ;;  %v419_v62 = vmul.f32 %v416_v41, %v413_v54 }
  0xf7   : > { %v420_v10 = vadd.f32 %v418_v61, %v395_v2  ;;  %v421_v11 = vadd.f32 %v419_v62, %v396_v4  ;;  %v523_v41 = vpop.permute.xlu0 %522 }
  0xf9   : > { %v425_v47 = vpop.permute.xlu1 %424 }
  0xfa   : > { %v427_v49 = vsel %vm426_vm6, %v423_v22, %v425_v47  ;;  %v428_v50 = vsel %vm426_vm6, %v425_v47, %v423_v22 }
  0xfb   : > { %v437_v33 = vmul.f32 %v432_v42, %v427_v49  ;;  %v438_v57 = vmul.f32 %v436_v43, %v428_v50 }
  0xfd   : > { %v448_v58 = vpop.permute.xlu1 %447  ;;  %v443_v5 = vmul.f32 %v441_v55, %v437_v33  ;;  %v444_v6 = vmul.f32 %v441_v55, %v438_v57 }
  0xff   : > { %v445_v29 = vadd.f32 %v443_v5, %v420_v10  ;;  %v446_v3 = vadd.f32 %v444_v6, %v421_v11 }
 0x101   : > { %v450_v7 = vpop.permute.xlu1 %449 }
 0x102   : > { %v452_v8 = vsel %vm451_vm7, %v448_v58, %v450_v7  ;;  %v453_v9 = vsel %vm451_vm7, %v450_v7, %v448_v58 }
 0x103   : > { %v462_v12 = vmul.f32 %v645_v63, %v452_v8  ;;  %v463_v13 = vmul.f32 %v646_v0, %v453_v9 }
 0x105   : > { %v468_v14 = vmul.f32 %v466_v1, %v462_v12  ;;  %v469_v15 = vmul.f32 %v466_v1, %v463_v13  ;;  %v491_v17 = vpop.permute.xlu1 %490 }
 0x107   : > { %v470_v20 = vadd.f32 %v468_v14, %v445_v29  ;;  %v471_v21 = vadd.f32 %v469_v15, %v446_v3 }
 0x109   : > { %v480_v23 = vrot.slane %v470_v20, %v1066_v30  ;;  %v484_v25 = vrot.slane %v471_v21, %v1066_v30  ;;  %v496_v26 = vrot.slane %v470_v20, %v1073_v34  ;;  %v500_v22 = vrot.slane %v471_v21, %v1073_v34 }
 0x10a   : > { %v528_v27 = vrot.slane %v470_v20, %v1092_v45  ;;  %v532_v31 = vrot.slane %v471_v21, %v1092_v45  ;;  %v512_v36 = vrot.slane %v470_v20, %v1076_v35  ;;  %v516_v24 = vrot.slane %v471_v21, %v1076_v35  ;;  %v507_v37 = vpop.permute.xlu1 %506 }
 0x10b   : > { %v485_v38 = vmul.f32 %v480_v23, %v475_v18  ;;  %v486_v19 = vmul.f32 %v484_v25, %v475_v18  ;;  %v501_v40 = vmul.f32 %v496_v26, %v491_v17  ;;  %v502_v16 = vmul.f32 %v500_v22, %v491_v17 }
 0x10c   : > { %v517_v43 = vmul.f32 %v512_v36, %v507_v37  ;;  %v518_v44 = vmul.f32 %v516_v24, %v507_v37  ;;  %v533_v34 = vmul.f32 %v528_v27, %v523_v41  ;;  %v534_v45 = vmul.f32 %v532_v31, %v523_v41 }
 0x10d   : > { %v503_v30 = vadd.f32 %v501_v40, %v485_v38  ;;  %v504_v42 = vadd.f32 %v502_v16, %v486_v19 }
 0x10f   : > { %v519_v46 = vadd.f32 %v517_v43, %v503_v30  ;;  %v520_v28 = vadd.f32 %v518_v44, %v504_v42 }
 0x111   : > { %v535_v35 = vadd.f32 %v533_v34, %v519_v46  ;;  %v536_v39 = vadd.f32 %v534_v45, %v520_v28 }
 0x113   : > { %537 = vst [vmem:[%s228_s5] sm:$0xff] %v535_v35  ;;  %538 = vst [vmem:[%s228_s5 + $0x8] sm:$0xff] %v536_v39 }
 0x114   : > { %812 = shalt.err (!%p809_p0)
}
 0x115   : > { %s813_s8 = scalar_lea.hbm %s1153_s26, 256  ;;  %s817_s13 = scalar_lea.hbm %s1194_s4, 512 }
 0x116   : > { %p814_p5 = scmp.ne.s32.totalorder %s1153_s26, %s813_s8  ;;  %p818_p1 = scmp.lt.s32.totalorder %s1153_s26, %s1194_s4 }
 0x117   : > { %p819_p4 = scmp.lt.s32.totalorder %s817_s13, %s813_s8 }
 0x118   : > { %p815_p9 = pnand %p814_p5, %p1210_p3 }
 0x119   : > { %p820_p6 = por %p819_p4, %p818_p1 }
 0x11a   : > { %p816_p12 = pneg %p815_p9 }
 0x11c   : > { %p821_p8 = pnand %p820_p6, %p816_p12 }
 0x11e   : > { %824 = shalt.err (!%p821_p8)
}
 0x11f   : > { %660 = dma.vmem_to_hbm [thread:$0]  (%p1210_p3), %s555_s6, 256, %s1153_s26, %s540_s21  }
 0x120 PF: > { %s566_s20 = sand.u32 1, %s855_s15   ;;  %p1211_p11 = scmp.ne.s32.totalorder %s1200_s22, 0 }
 0x121   : > { %p1212_p7 = scmp.ge.s32.totalorder %s867_s18, 2  ;;  %s567_s30 = scalar_lea.sflag [#allocation4], %s566_s20 }
 0x123   : > { %p671_p10 = pnand %p1212_p7, %p1211_p11 }
 0x125   : > { %p672_p2 = pneg %p671_p10 }
 0x127   : > { %850 = dma.done.wait (%p672_p2), %s567_s30, 256  }
 0x128   : > { %852 = vsyncadd (%p672_p2), %s567_s30, 4294967040  ;;  %p18_p13 = scmp.ge.s32.totalorder %s971_s27, 4   ;;  %s1213_s15 = smov %s859_s16 }
 0x129   : > { %s1214_s16 = smov %s863_s17  ;;  %s1215_s17 = smov %s988_s9 }
 0x12a   : > { %s1216_s18 = smov %s971_s27  ;;  %20 = sbr.rel (!%p18_p13) target bundleno = 6 (0x6), region = 85 }
 0x12f   :  { %572 = vsyncpa [#allocation3], 1 }
 0x130   :  { %574 = vsyncpa [#allocation3 + $0x1], 1 }
 0x131   :  { %575 = vsyncpa [#allocation6], 1 }
 0x132   :  { %576 = vsyncpa [#allocation4], 1 }
 0x133   :  { %578 = vsyncpa [#allocation4 + $0x1], 1 }

</bundles_post_ra>
